<compile_context>
chip_gen: v7x
topology: tpu7x:2x2x1
jax: 0.10.0
libtpu: 0.0.40
codegen_flags: <defaults>
</compile_context>

<pallas_src>
import functools

import jax
import jax.numpy as jnp
from jax.experimental import pallas as pl
from jax.experimental.pallas import tpu as pltpu


# ---------------------------------------------------------------------------
# Fused Pallas kernel: 1x1x1 conv (channel matmul) + bias + activation
# ---------------------------------------------------------------------------

def _out_transition_kernel(x_ref, w_ref, b_ref, o_ref, *, activation):
    # x_ref: (TM, C)  w_ref: (C, L)  b_ref: (1, L)  o_ref: (TM, L)
    y = jnp.dot(x_ref[...], w_ref[...], preferred_element_type=jnp.float32)
    y = y + b_ref[...]
    if activation == "softmax":
        # softmax over the label/channel axis (lane axis)
        m = jnp.max(y, axis=-1, keepdims=True)
        e = jnp.exp(y - m)
        y = e * pl.reciprocal(jnp.sum(e, axis=-1, keepdims=True), approx=False)
    elif activation == "sigmoid":
        y = 1.0 / (1.0 + jnp.exp(-y))
    # else: identity (no activation)
    o_ref[...] = y.astype(o_ref.dtype)


def output_transition_3d(x, w, b, out_activation, *, tm=256):
    """x: (N, C, D, H, W) f32; w: (C, L) pre-transposed conv weight; b: (L,).

    Returns (N, L, D, H, W) f32, matching OutputTransition3D.forward.
    """
    N, C, D, H, W = x.shape
    L = w.shape[1]
    M = N * D * H * W

    # channels-last flat layout: each row is one voxel's channel vector
    x2 = jnp.transpose(x, (0, 2, 3, 4, 1)).reshape(M, C)

    # pad the row (sublane/grid) dim to a multiple of the tile size
    grid_m = pl.cdiv(M, tm)
    Mp = grid_m * tm
    if Mp != M:
        x2 = jnp.pad(x2, ((0, Mp - M), (0, 0)))

    kernel = functools.partial(_out_transition_kernel, activation=out_activation)

    out = pl.pallas_call(
        kernel,
        out_shape=jax.ShapeDtypeStruct((Mp, L), jnp.float32),
        grid=(grid_m,),
        in_specs=[
            pl.BlockSpec((tm, C), lambda i: (i, 0)),   # streamed spatial tile
            pl.BlockSpec((C, L), lambda i: (0, 0)),    # weight resident
            pl.BlockSpec((1, L), lambda i: (0, 0)),    # bias resident
        ],
        out_specs=pl.BlockSpec((tm, L), lambda i: (i, 0)),
        compiler_params=pltpu.CompilerParams(
            dimension_semantics=("parallel",),          # independent tiles -> megacore on v7x
            vmem_limit_bytes=64 * 1024 * 1024,
        ),
    )(x2, w, b.reshape(1, -1))

    out = out[:M].reshape(N, D, H, W, L)
    return jnp.transpose(out, (0, 4, 1, 2, 3))


# ---------------------------------------------------------------------------
# Parameter construction (deterministic; mimics nn.Conv3d(k=1) init ranges)
# ---------------------------------------------------------------------------

def make_params(key, in_channel, n_labels):
    kw, kb = jax.random.split(key)
    bound = 1.0 / (in_channel ** 0.5)
    # PyTorch Conv3d weight is (L, C, 1, 1, 1); we store it pre-transposed as (C, L).
    w = jax.random.uniform(kw, (in_channel, n_labels), jnp.float32, -bound, bound)
    b = jax.random.uniform(kb, (n_labels,), jnp.float32, -bound, bound)
    return w, b


# ---------------------------------------------------------------------------
# Plain-JAX reference for a sanity check
# ---------------------------------------------------------------------------

def output_transition_3d_ref(x, w, b, out_activation):
    y = jnp.einsum("ncdhw,cl->nldhw", x, w) + b[None, :, None, None, None]
    if out_activation == "softmax":
        y = jax.nn.softmax(y, axis=1)
    elif out_activation == "sigmoid":
        y = jax.nn.sigmoid(y)
    return y


if __name__ == "__main__":
    # Small shapes consistent with the module: 5-D input (N, C, D, H, W).
    N, C, D, H, W = 2, 4, 3, 8, 8
    n_labels = 5

    key = jax.random.PRNGKey(0)
    kx, kp = jax.random.split(key)
    x = jax.random.normal(kx, (N, C, D, H, W), jnp.float32)
    w, b = make_params(kp, C, n_labels)

    ok = True
    for act in ("softmax", "sigmoid", "none"):
        out = output_transition_3d(x, w, b, act)
        out = jax.block_until_ready(out)
        ref = output_transition_3d_ref(x, w, b, act)
        assert out.shape == (N, n_labels, D, H, W)
        if not jnp.allclose(out, ref, atol=1e-5, rtol=1e-5):
            ok = False

    if ok:
        print("KERNEL_OK")
</pallas_src>

<mosaic_0001>
module attributes {stable_mosaic.version = 11 : i64} {
  func.func @_out_transition_kernel(%arg0: i32, %arg1: memref<256x4xf32, #tpu.memory_space<vmem>>, %arg2: memref<4x5xf32, #tpu.memory_space<vmem>>, %arg3: memref<1x5xf32, #tpu.memory_space<vmem>>, %arg4: memref<256x5xf32, #tpu.memory_space<vmem>>) attributes {dimension_semantics = [#tpu.dimension_semantics<parallel>], iteration_bounds = array<i64: 2>, scalar_prefetch = 0 : i64, scratch_operands = 0 : i64, tpu.core_type = #tpu.core_type<tc>, window_params = [{transform_indices = @transform_0, window_bounds = array<i64: 256, 4>}, {pipeline_mode = #tpu.pipeline_mode<synchronous>, transform_indices = @transform_1, window_bounds = array<i64: 4, 5>}, {pipeline_mode = #tpu.pipeline_mode<synchronous>, transform_indices = @transform_2, window_bounds = array<i64: 1, 5>}, {transform_indices = @transform_3, window_bounds = array<i64: 256, 5>}]} {
    %c0 = arith.constant 0 : index
    %c0_0 = arith.constant 0 : index
    %0 = vector.load %arg1[%c0, %c0_0] : memref<256x4xf32, #tpu.memory_space<vmem>>, vector<256x4xf32>
    %c0_1 = arith.constant 0 : index
    %c0_2 = arith.constant 0 : index
    %1 = vector.load %arg2[%c0_1, %c0_2] : memref<4x5xf32, #tpu.memory_space<vmem>>, vector<4x5xf32>
    %cst = arith.constant dense<0.000000e+00> : vector<256x5xf32>
    %2 = tpu.matmul %0, %1, %cst {dimension_numbers = #tpu.dot_dimension_numbers<[1], [0], [0], [1], [0, 0, 1, 1], [], []>} : vector<256x4xf32>, vector<4x5xf32>, vector<256x5xf32> -> vector<256x5xf32>
    %c0_3 = arith.constant 0 : index
    %c0_4 = arith.constant 0 : index
    %3 = vector.load %arg3[%c0_3, %c0_4] : memref<1x5xf32, #tpu.memory_space<vmem>>, vector<1x5xf32>
    %4 = vector.broadcast %3 : vector<1x5xf32> to vector<256x5xf32>
    %5 = arith.addf %2, %4 : vector<256x5xf32>
    %cst_5 = arith.constant dense<0xFF800000> : vector<256xf32>
    %6 = vector.multi_reduction <maximumf>, %5, %cst_5 [1] : vector<256x5xf32> to vector<256xf32>
    %7 = vector.shape_cast %6 : vector<256xf32> to vector<256x1xf32>
    %8 = vector.broadcast %7 : vector<256x1xf32> to vector<256x5xf32>
    %9 = arith.subf %5, %8 : vector<256x5xf32>
    %10 = math.exp %9 : vector<256x5xf32>
    %cst_6 = arith.constant dense<0.000000e+00> : vector<256xf32>
    %11 = vector.multi_reduction <add>, %10, %cst_6 [1] : vector<256x5xf32> to vector<256xf32>
    %12 = vector.shape_cast %11 : vector<256xf32> to vector<256x1xf32>
    %13 = tpu.reciprocal %12 : vector<256x1xf32> -> vector<256x1xf32>
    %14 = vector.broadcast %13 : vector<256x1xf32> to vector<256x5xf32>
    %15 = arith.mulf %10, %14 : vector<256x5xf32>
    %c0_7 = arith.constant 0 : index
    %c0_8 = arith.constant 0 : index
    %16 = vector.load %arg4[%c0_7, %c0_8] : memref<256x5xf32, #tpu.memory_space<vmem>>, vector<256x5xf32>
    tpu.vector_store %arg4[%c0_7, %c0_8], %15 {strides = array<i32>} : memref<256x5xf32, #tpu.memory_space<vmem>>, vector<256x5xf32>,
    return
  }
  func.func @transform_0(%arg0: i32) -> (i32, i32) {
    %c0_i32 = arith.constant 0 : i32
    %c0_i32_0 = arith.constant 0 : i32
    return %arg0, %c0_i32 : i32, i32
  }
  func.func @transform_1(%arg0: i32) -> (i32, i32) {
    %c0_i32 = arith.constant 0 : i32
    %c0_i32_0 = arith.constant 0 : i32
    %c0_i32_1 = arith.constant 0 : i32
    return %c0_i32, %c0_i32_0 : i32, i32
  }
  func.func @transform_2(%arg0: i32) -> (i32, i32) {
    %c0_i32 = arith.constant 0 : i32
    %c0_i32_0 = arith.constant 0 : i32
    %c0_i32_1 = arith.constant 0 : i32
    return %c0_i32, %c0_i32_0 : i32, i32
  }
  func.func @transform_3(%arg0: i32) -> (i32, i32) {
    %c0_i32 = arith.constant 0 : i32
    %c0_i32_0 = arith.constant 0 : i32
    return %arg0, %c0_i32 : i32, i32
  }
}

</mosaic_0001>

<bundles_post_ra>
// kernel: tpu_custom_call.1
= control target key start
LH: loop header
LB: loop body
LE: loop exit
PB: predicated region body
PF: predicated region fallthrough
CT: control target
= control target key end

     0   :  { %8 = vsyncpa [#allocation3], 0  ;;  %s2320_s0 = inlined_call_operand.hbm [shape: f32[512,4], index: 0, kind: input, shape index: {}]   ;;  %s2321_s1 = inlined_call_operand.hbm [shape: f32[4,5], index: 1, kind: input, shape index: {}]   ;;  %s2322_s2 = inlined_call_operand.hbm [shape: f32[1,5], index: 2, kind: input, shape index: {}]   ;;  %s2323_s3 = inlined_call_operand.hbm [shape: f32[512,5], index: 3, kind: output, shape index: {}]  }
   0x1   :  { %10 = vsyncpa [#allocation3 + $0x1], 0 }
   0x2   :  { %11 = vsyncpa [#allocation6], 0 }
   0x3   :  { %12 = vsyncpa [#allocation4], 0 }
   0x4   :  { %14 = vsyncpa [#allocation4 + $0x1], 0  ;;  %s1597_s12 = smov 0   ;;  %s1599_s13 = smov 0  }
   0x5   :  { %s1601_s14 = smov 0   ;;  %s1603_s15 = smov 0  }
   0x6 LB: > { %s1618_s16 = sadd.s32 4294967295, %s1567_s15   ;;  %s1073_s17 = sadd.s32 4294967294, %s1567_s15   ;;  %s1567_s15 = sphi %s1603_s15, %s2348_s15   ;;  %s1563_s14 = sphi %s1601_s14, %s2347_s14   ;;  %s1559_s13 = sphi %s1599_s13, %s2346_s13   ;;  %s1555_s12 = sphi %s1597_s12, %s2345_s12  }
   0x7   : > { %s1622_s18 = sadd.s32 1, %s1567_s15   ;;  %s27_s19 = sadd.s32 1, %s1563_s14 }
   0x8   : > { %s24_s20 = ssub.s32 %s1567_s15, %s1622_s18  ;;  %p34_p0 = scmp.ne.s32.totalorder %s1563_s14, %s1559_s13 }
   0x9   : > { %p25_p1 = scmp.eq.s32.totalorder %s24_s20, 0  ;;  %p35_p2 = scmp.eq.s32.totalorder %s1567_s15, 0 }
   0xa   : > { %p40_p3 = scmp.ne.s32.totalorder %s1559_s13, %s1555_s12  ;;  %p2324_p4 = scmp.eq.s32.totalorder %s1618_s16, 0 }
   0xb   : > { %s1634_s21 = scalar_select %p25_p1, %s1563_s14, %s27_s19  }
   0xc   : > { %p1636_p5 = por %p35_p2, %p34_p0  ;;  %p1642_p6 = por %p2324_p4, %p40_p3 }
   0xd   : > { %p106_p7 = scmp.eq.s32.totalorder %s1618_s16, 1  ;;  %p112_p8 = scmp.eq.s32.totalorder %s1073_s17, 1 }
   0xe   : > { %s2330_s23 = scalar_select %p1642_p6, 1, 0 }
   0xf   : > { %p1074_p9 = scmp.ge.s32.totalorder %s1567_s15, 1  ;;  %p119_p10 = scmp.lt.s32.totalorder %s1567_s15, 3 }
  0x10   : > { %p1649_p11 = por %p106_p7, %p34_p0  ;;  %p1653_p12 = por %p112_p8, %p40_p3 }
  0x11   : > { %p1657_p13 = pnand %p1074_p9, %p119_p10  ;;  %s1569_s27 = smov [#allocation5]  }
  0x12   : > { %s2331_s24 = scalar_select %p1649_p11, 1, 0 }
  0x13   : > { %s2332_s25 = scalar_select %p1653_p12, 1, 0 }
  0x14   : > { %s2333_s26 = scalar_select %p1657_p13, 1, 0 }
  0x15   : > { %p1224_p2 = pneg %p1657_p13  ;;  %s132_s28 = sshll.u32 %s1569_s27, 4  ;;  %s133_s28 = int_to_ptr.vmem [resolvable:$true] %s132_s28 }
  0x16   : > { %p1241_p4 = scmp.lt.s32.totalorder %s1567_s15, 2  ;;  %p2334_p0 = scmp.eq.s32.totalorder %s1618_s16, 0 }
  0x17   : > { %s1570_s4 = smov [#allocation7]   ;;  %s1411_s8 = scalar_lea.hbm %s2321_s1, 64 }
  0x18   : > { %p1667_p7 = pnand %p1224_p2, %p2334_p0  ;;  %p1673_p3 = pnand %p1241_p4, %p1636_p5 }
  0x19   : > { %s143_s5 = sshll.u32 %s1570_s4, 4  ;;  %p1412_p8 = scmp.ne.s32.totalorder %s2321_s1, %s1411_s8  ;;  %s1677_s5 = int_to_ptr.vmem [resolvable:$true] %s143_s5 }
  0x1a   : > { %s2336_s30 = scalar_select %p1673_p3, 1, 0 }
  0x1b   : > { %p1413_p9 = pneg %p1667_p7  ;;  %p1418_p10 = scmp.lt.u32.totalorder %s1411_s8, %s2321_s1 }
  0x1d   : > { %p1414_p4 = pnand %p1413_p9, %p1412_p8 }
  0x1f   : > { %p1415_p5 = pneg %p1414_p4 }
  0x21   : > { %p1420_p2 = pnand %p1418_p10, %p1415_p5 }
  0x23   : > { %1423 = shalt.err (!%p1420_p2)
}
  0x24   : > { %s1424_s19 = scalar_lea.vmem %s133_s28, 64  ;;  %p1432_p11 = scmp.lt.s32.totalorder %s133_s28, %s133_s28 }
  0x25   : > { %p1425_p0 = scmp.ne.s32.totalorder %s133_s28, %s1424_s19  ;;  %p1433_p6 = scmp.lt.s32.totalorder %s1424_s19, %s1424_s19 }
  0x27   : > { %p1427_p1 = pnand %p1425_p0, %p1413_p9  ;;  %p1434_p13 = por %p1433_p6, %p1432_p11 }
  0x29   : > { %p1428_p12 = pneg %p1427_p1 }
  0x2b   : > { %p1435_p3 = pnand %p1434_p13, %p1428_p12 }
  0x2d   : > { %1438 = shalt.err (!%p1435_p3)
}
  0x2e   : > { %1227 = dma.hbm_to_vmem [thread:$0]  (!%p1667_p7), %s2321_s1, 64, %s133_s28, [#allocation6]  }
  0x2f   : > { %s154_s27 = sand.u32 1, %s1563_s14   ;;  %s1439_s7 = scalar_lea.hbm %s2322_s2, 16 }
  0x30   : > { %p1440_p1 = scmp.ne.s32.totalorder %s2322_s2, %s1439_s7  ;;  %p1446_p12 = scmp.lt.u32.totalorder %s1439_s7, %s2322_s2 }
  0x32   : > { %p1442_p6 = pnand %p1440_p1, %p1413_p9 }
  0x34   : > { %p1443_p11 = pneg %p1442_p6 }
  0x36   : > { %p1448_p13 = pnand %p1446_p12, %p1443_p11 }
  0x38   : > { %1451 = shalt.err (!%p1448_p13)
}
  0x39   : > { %s1452_s28 = scalar_lea.vmem %s1677_s5, 16  ;;  %s1459_s17 = scalar_lea.vmem %s1677_s5, 32 }
  0x3a   : > { %p1453_p3 = scmp.ne.s32.totalorder %s1677_s5, %s1452_s28  ;;  %p1460_p5 = scmp.lt.s32.totalorder %s1677_s5, %s1677_s5 }
  0x3b   : > { %p1461_p10 = scmp.lt.s32.totalorder %s1459_s17, %s1452_s28 }
  0x3c   : > { %p1455_p8 = pnand %p1453_p3, %p1413_p9 }
  0x3d   : > { %p1462_p2 = por %p1461_p10, %p1460_p5 }
  0x3e   : > { %p1456_p4 = pneg %p1455_p8 }
  0x40   : > { %p1463_p0 = pnand %p1462_p2, %p1456_p4 }
  0x42   : > { %1466 = shalt.err (!%p1463_p0)
}
  0x43   : > { %1230 = dma.hbm_to_vmem [thread:$0]  (!%p1667_p7), %s2322_s2, 16, %s1677_s5, [#allocation6]  }
  0x44   : > { %s1078_s22 = sshll.u32 %s154_s27, 8  ;;  %s1125_s4 = sshll.u32 %s1567_s15, 12 }
  0x45   : > { %s1732_s8 = scalar_lea.hbm %s2320_s0, %s1125_s4  ;;  %s158_s29 = scalar_lea.vmem [#allocation2], %s1078_s22 }
  0x46   : > { %s165_s9 = sshll.u32 %s158_s29, 4  ;;  %s1736_s10 = scalar_lea.sflag [#allocation3], %s154_s27  ;;  %s1734_s9 = int_to_ptr.vmem [resolvable:$true] %s165_s9 }
  0x47   : > { %s1467_s11 = scalar_lea.hbm %s1732_s8, 4096  ;;  %p2337_p7 = scmp.ne.s32.totalorder %s2336_s30, 0 }
  0x48   : > { %p1468_p9 = scmp.ne.s32.totalorder %s1732_s8, %s1467_s11  ;;  %s1472_s17 = scalar_lea.hbm %s2320_s0, 8192 }
  0x49   : > { %p1469_p1 = pneg %p2337_p7  ;;  %p1473_p12 = scmp.lt.u32.totalorder %s1732_s8, %s2320_s0 }
  0x4a   : > { %p1474_p13 = scmp.lt.u32.totalorder %s1472_s17, %s1467_s11  ;;  %p1476_p8 = scmp.lt.u32.totalorder %s1467_s11, %s1732_s8 }
  0x4b   : > { %p1470_p6 = pnand %p1469_p1, %p1468_p9 }
  0x4c   : > { %p1475_p3 = por %p1474_p13, %p1473_p12 }
  0x4d   : > { %p1471_p11 = pneg %p1470_p6 }
  0x4e   : > { %p1477_p4 = por %p1476_p8, %p1475_p3 }
  0x50   : > { %p1478_p5 = pnand %p1477_p4, %p1471_p11 }
  0x52   : > { %1481 = shalt.err (!%p1478_p5)
}
  0x53   : > { %s1482_s27 = scalar_lea.vmem %s1734_s9, 4096  ;;  %s1571_s22 = smov [#allocation2]  }
  0x54   : > { %p1483_p10 = scmp.ne.s32.totalorder %s1734_s9, %s1482_s27  ;;  %s1487_s4 = sshll.u32 %s1571_s22, 4  ;;  %s1488_s4 = int_to_ptr.vmem [resolvable:$false] %s1487_s4 }
  0x55   : > { %s1489_s6 = scalar_lea.vmem %s1488_s4, 8192  ;;  %p1490_p9 = scmp.lt.s32.totalorder %s1734_s9, %s1488_s4 }
  0x56   : > { %p1485_p2 = pnand %p1483_p10, %p1469_p1  ;;  %p1491_p6 = scmp.lt.s32.totalorder %s1489_s6, %s1482_s27 }
  0x58   : > { %p1486_p0 = pneg %p1485_p2  ;;  %p1492_p12 = por %p1491_p6, %p1490_p9 }
  0x5a   : > { %p1493_p13 = pnand %p1492_p12, %p1486_p0 }
  0x5c   : > { %1496 = shalt.err (!%p1493_p13)
}
  0x5d   : > { %s1572_s7 = smov 128   ;;  %s1573_s29 = smov 8  }
  0x5e   : > { %1234 = dma.hbm_to_vmem [thread:$0]  (!%p2337_p7), %s1732_s8, 4096, %s1734_s9, %s1736_s10, %s1572_s7, %s1572_s7, %s1573_s29  }
  0x5f   : > { %p2338_p1 = scmp.ne.s32.totalorder %s2333_s26, 0 }
  0x60   : > { %s1767_s11 = sand.u32 (!%p2338_p1), 1, %s1559_s13   ;;  %p2339_p11 = scmp.ne.s32.totalorder (!%p2338_p1), %s2330_s23, 0 }
  0x61   : > { %177 = sbr.rel (%p2338_p1) target bundleno = 720 (0x2d0), region = 32  ;;  %s1082_s5 = sshll.u32 (!%p2338_p1), %s1767_s11, 8 }
  0x62   : > { %s180_s28 = scalar_lea.sflag (!%p2338_p1), [#allocation3], %s1767_s11  ;;  %s1773_s17 = scalar_lea.vmem (!%p2338_p1), [#allocation2], %s1082_s5 }
  0x68   : > { %1542 = dma.done.wait (%p2339_p11), %s180_s28, 4096  }
  0x69   : > { %1544 = vsyncadd (%p2339_p11), %s180_s28, 4294963200  ;;  %p2340_p7 = scmp.eq.s32.totalorder %s1618_s16, 0 }
  0x6b   : > { %1546 = dma.done.wait (%p2340_p7), [#allocation6], 80   ;;  %p2341_p3 = pmov %p2340_p7 }
  0x6c   : > { %vm353_vm0 = vcmask 1043456   ;;  %v248_v0 = vld [vmem:[#allocation5] sm:$0xf]  ;;  %vm256_vm1 = vcmask 31744   ;;  %v217_v3 = vld [vmem:[%s1773_s17 + $0x8] sm:$0xff]  ;;  %v218_v5 = vld [vmem:[%s1773_s17 + $0x10] sm:$0xff] }
  0x6d   : > { %1548 = vsyncadd (%p2341_p3), [#allocation6], 4294967216  ;;  %v216_v1 = vld [vmem:[%s1773_s17] sm:$0xff]  ;;  %1160 = vmatprep.subr.msk.mxu0 %vm353_vm0, %v248_v0  ;;  %1210 = vmatprep.subr.msk.mxu1 %vm353_vm0, %v248_v0  ;;  %v233_v4 = vld [vmem:[%s1773_s17 + $0x88] sm:$0xff]  ;;  %vm582_vm2 = vcmask 39936   ;;  %s2172_s23 = scalar_lea.vmem [#allocation8], %s1082_s5 }
  0x6e   : > { %v232_v2 = vld [vmem:[%s1773_s17 + $0x80] sm:$0xff]  ;;  %1161 = vmatpush3.msk.msra.mxu0 %vm353_vm0, %v248_v0  ;;  %1211 = vmatpush3.msk.msra.mxu1 %vm353_vm0, %v248_v0  ;;  %v234_v6 = vld [vmem:[%s1773_s17 + $0x90] sm:$0xff]  ;;  %v219_v7 = vld [vmem:[%s1773_s17 + $0x18] sm:$0xff]  ;;  %s1126_s26 = sshll.u32 %s1618_s16, 12  ;;  %s981_s30 = sshll.u32 %s2172_s23, 4  ;;  %s2273_s30 = int_to_ptr.vmem [resolvable:$true] %s981_s30 }
  0x6f   : > { %1162 = vmatprep.mubr.msk.f32.mxu0 %vm256_vm1, %v216_v1  ;;  %1186 = vmatprep.mubr.msk.f32.mxu1 %vm256_vm1, %v232_v2  ;;  %v235_v8 = vld [vmem:[%s1773_s17 + $0x98] sm:$0xff]  ;;  %v220_v9 = vld [vmem:[%s1773_s17 + $0x20] sm:$0xff]  ;;  %v221_v11 = vld [vmem:[%s1773_s17 + $0x28] sm:$0xff]  ;;  %s2271_s10 = scalar_lea.hbm %s2323_s3, %s1126_s26  ;;  %s968_s16 = scalar_lea.sflag [#allocation4], %s1767_s11 }
  0x70   : > { %1163 = vmatmul.mubr.msk.f32.vlgmr.msra.gmra.mrb[0].mxu0 %vm256_vm1, %v217_v3  ;;  %1187 = vmatmul.mubr.msk.f32.vlgmr.msra.gmra.mrb[0].mxu1 %vm256_vm1, %v233_v4  ;;  %v236_v10 = vld [vmem:[%s1773_s17 + $0xa0] sm:$0xff]  ;;  %v237_v12 = vld [vmem:[%s1773_s17 + $0xa8] sm:$0xff]  ;;  %v222_v13 = vld [vmem:[%s1773_s17 + $0x30] sm:$0xff]  ;;  %s1497_s19 = scalar_lea.vmem %s2273_s30, 4096  ;;  %p2342_p4 = scmp.ne.s32.totalorder %s2331_s24, 0 }
  0x71   : > { %1165 = vmatprep.mubr.msk.f32.mxu0 %vm256_vm1, %v218_v5  ;;  %1189 = vmatprep.mubr.msk.f32.mxu1 %vm256_vm1, %v234_v6  ;;  %v238_v14 = vld [vmem:[%s1773_s17 + $0xb0] sm:$0xff]  ;;  %v223_v15 = vld [vmem:[%s1773_s17 + $0x38] sm:$0xff]  ;;  %v224_v17 = vld [vmem:[%s1773_s17 + $0x40] sm:$0xff]  ;;  %p1498_p8 = scmp.ne.s32.totalorder %s2273_s30, %s1497_s19  ;;  %s1574_s20 = smov [#allocation8]  }
  0x72   : > { %v239_v16 = vld [vmem:[%s1773_s17 + $0xb8] sm:$0xff]  ;;  %v240_v18 = vld [vmem:[%s1773_s17 + $0xc0] sm:$0xff]  ;;  %v225_v19 = vld [vmem:[%s1773_s17 + $0x48] sm:$0xff]  ;;  %s1501_s27 = sshll.u32 %s1574_s20, 4  ;;  %s1502_s27 = int_to_ptr.vmem [resolvable:$false] %s1501_s27 }
  0x73   : > { %v241_v20 = vld [vmem:[%s1773_s17 + $0xc8] sm:$0xff]  ;;  %v226_v21 = vld [vmem:[%s1773_s17 + $0x50] sm:$0xff]  ;;  %v227_v23 = vld [vmem:[%s1773_s17 + $0x58] sm:$0xff]  ;;  %p1499_p5 = pnand %p1498_p8, %p2342_p4  ;;  %s1503_s22 = scalar_lea.vmem %s1502_s27, 8192 }
  0x74   : > { %1166 = vmatmul.mubr.msk.f32.gmra.mrb[2].mxu0 %vm256_vm1, %v219_v7  ;;  %1190 = vmatmul.mubr.msk.f32.gmra.mrb[2].mxu1 %vm256_vm1, %v235_v8  ;;  %v242_v22 = vld [vmem:[%s1773_s17 + $0xd0] sm:$0xff]  ;;  %v243_v24 = vld [vmem:[%s1773_s17 + $0xd8] sm:$0xff]  ;;  %v228_v25 = vld [vmem:[%s1773_s17 + $0x60] sm:$0xff]  ;;  %p1504_p2 = scmp.lt.s32.totalorder %s2273_s30, %s1502_s27  ;;  %p1505_p0 = scmp.lt.s32.totalorder %s1503_s22, %s1497_s19 }
  0x75   : > { %1168 = vmatprep.mubr.msk.f32.mxu0 %vm256_vm1, %v220_v9  ;;  %1192 = vmatprep.mubr.msk.f32.mxu1 %vm256_vm1, %v236_v10  ;;  %v244_v26 = vld [vmem:[%s1773_s17 + $0xe0] sm:$0xff]  ;;  %v229_v27 = vld [vmem:[%s1773_s17 + $0x68] sm:$0xff]  ;;  %v230_v29 = vld [vmem:[%s1773_s17 + $0x70] sm:$0xff]  ;;  %p1500_p10 = pneg %p1499_p5 }
  0x76   : > { %v245_v28 = vld [vmem:[%s1773_s17 + $0xe8] sm:$0xff]  ;;  %v246_v30 = vld [vmem:[%s1773_s17 + $0xf0] sm:$0xff]  ;;  %v231_v31 = vld [vmem:[%s1773_s17 + $0x78] sm:$0xff]  ;;  %p1506_p9 = por %p1505_p0, %p1504_p2 }
  0x77   : > { %v247_v32 = vld [vmem:[%s1773_s17 + $0xf8] sm:$0xff]  ;;  %v1847_v33 = vld [vmem:[#allocation7] ss:$0 sm:$0xff] }
  0x78   : > { %1169 = vmatmul.mubr.msk.f32.gmra.mrb[4].mxu0 %vm256_vm1, %v221_v11  ;;  %1193 = vmatmul.mubr.msk.f32.gmra.mrb[4].mxu1 %vm256_vm1, %v237_v12  ;;  %p1507_p6 = pnand %p1506_p9, %p1500_p10 }
  0x79   : > { %1171 = vmatprep.mubr.msk.f32.mxu0 %vm256_vm1, %v222_v13  ;;  %1195 = vmatprep.mubr.msk.f32.mxu1 %vm256_vm1, %v238_v14 }
  0x7c   : > { %1172 = vmatmul.mubr.msk.f32.gmra.mrb[6].mxu0 %vm256_vm1, %v223_v15  ;;  %1196 = vmatmul.mubr.msk.f32.gmra.mrb[6].mxu1 %vm256_vm1, %v239_v16 }
  0x7d   : > { %1174 = vmatprep.mubr.msk.f32.mxu0 %vm256_vm1, %v224_v17  ;;  %1198 = vmatprep.mubr.msk.f32.mxu1 %vm256_vm1, %v240_v18 }
  0x80   : > { %1175 = vmatmul.mubr.msk.f32.gmra.mrb[8].mxu0 %vm256_vm1, %v225_v19  ;;  %1199 = vmatmul.mubr.msk.f32.gmra.mrb[8].mxu1 %vm256_vm1, %v241_v20 }
  0x81   : > { %1177 = vmatprep.mubr.msk.f32.mxu0 %vm256_vm1, %v226_v21  ;;  %1201 = vmatprep.mubr.msk.f32.mxu1 %vm256_vm1, %v242_v22 }
  0x84   : > { %1178 = vmatmul.mubr.msk.f32.gmra.mrb[10].mxu0 %vm256_vm1, %v227_v23  ;;  %1202 = vmatmul.mubr.msk.f32.gmra.mrb[10].mxu1 %vm256_vm1, %v243_v24 }
  0x85   : > { %1180 = vmatprep.mubr.msk.f32.mxu0 %vm256_vm1, %v228_v25  ;;  %1204 = vmatprep.mubr.msk.f32.mxu1 %vm256_vm1, %v244_v26 }
  0x88   : > { %1181 = vmatmul.mubr.msk.f32.gmra.mrb[12].mxu0 %vm256_vm1, %v229_v27  ;;  %1205 = vmatmul.mubr.msk.f32.gmra.mrb[12].mxu1 %vm256_vm1, %v245_v28 }
  0x89   : > { %1183 = vmatprep.mubr.msk.f32.mxu0 %vm256_vm1, %v230_v29  ;;  %1207 = vmatprep.mubr.msk.f32.mxu1 %vm256_vm1, %v246_v30 }
  0x8c   : > { %1184 = vmatmul.mubr.msk.f32.gmra.mrb[14].mxu0 %vm256_vm1, %v231_v31  ;;  %1208 = vmatmul.mubr.msk.f32.gmra.mrb[14].mxu1 %vm256_vm1, %v247_v32 }
 0x143   : > { %v1164_v34 = vpop.f32.mrb[0].mxu0  ;;  %v1188_v35 = vpop.f32.mrb[0].mxu1 }
 0x144   : > { %v1850_v36 = vadd.f32 %v1164_v34, %v1847_v33  ;;  %v1853_v37 = vadd.f32 %v1188_v35, %v1847_v33  ;;  %v423_v38 = vpop.f32.mrb[1].mxu0  ;;  %v503_v39 = vpop.f32.mrb[1].mxu1 }
 0x145   : > { %v1856_v40 = vadd.f32 %v1847_v33, %v423_v38  ;;  %v1869_v49 = vadd.f32 %v1847_v33, %v503_v39 }
 0x146   : > { %v634_v41 = vsel %vm582_vm2, %v1853_v37, -inf  ;;  %v586_v42 = vsel %vm582_vm2, %v1850_v36, -inf }
 0x147   : > { %635 = vmax.xlane.f32.xlu1 %v634_v41  ;;  %587 = vmax.xlane.f32.xlu0 %v586_v42  ;;  %v1167_v43 = vpop.f32.mrb[2].mxu0  ;;  %v1191_v44 = vpop.f32.mrb[2].mxu1  ;;  %v583_v51 = vsel %vm582_vm2, %v1856_v40, -inf  ;;  %v631_v59 = vsel %vm582_vm2, %v1869_v49, -inf }
 0x148   : > { %v1863_v45 = vadd.f32 %v1167_v43, %v1847_v33  ;;  %v433_v46 = vpop.f32.mrb[3].mxu0  ;;  %v1866_v47 = vadd.f32 %v1191_v44, %v1847_v33  ;;  %v513_v48 = vpop.f32.mrb[3].mxu1 }
 0x149   : > { %v1878_v57 = vadd.f32 %v1847_v33, %v433_v46  ;;  %v1881_v58 = vadd.f32 %v1847_v33, %v513_v48 }
 0x14a   : > { %v592_v50 = vsel %vm582_vm2, %v1863_v45, -inf  ;;  %v640_v54 = vsel %vm582_vm2, %v1866_v47, -inf }
 0x14b   : > { %593 = vmax.xlane.f32.xlu1 %v592_v50  ;;  %584 = vmax.xlane.f32.xlu0 %v583_v51  ;;  %v1170_v52 = vpop.f32.mrb[4].mxu0  ;;  %v1194_v53 = vpop.f32.mrb[4].mxu1  ;;  %v589_v2 = vsel %vm582_vm2, %v1878_v57, -inf  ;;  %v637_v3 = vsel %vm582_vm2, %v1881_v58, -inf }
 0x14c   : > { %v443_v55 = vpop.f32.mrb[5].mxu0  ;;  %v523_v56 = vpop.f32.mrb[5].mxu1  ;;  %v1886_v62 = vadd.f32 %v1170_v52, %v1847_v33  ;;  %v1896_v6 = vadd.f32 %v1194_v53, %v1847_v33 }
 0x14d   : > { %v1889_v63 = vadd.f32 %v1847_v33, %v443_v55  ;;  %v1899_v7 = vadd.f32 %v1847_v33, %v523_v56 }
 0x14e   : > { %v598_v8 = vsel %vm582_vm2, %v1886_v62, -inf  ;;  %v646_v16 = vsel %vm582_vm2, %v1896_v6, -inf }
 0x14f   : > { %641 = vmax.xlane.f32.xlu1 %v640_v54  ;;  %632 = vmax.xlane.f32.xlu0 %v631_v59  ;;  %v1173_v60 = vpop.f32.mrb[6].mxu0  ;;  %v1197_v61 = vpop.f32.mrb[6].mxu1  ;;  %v595_v9 = vsel %vm582_vm2, %v1889_v63, -inf  ;;  %v643_v17 = vsel %vm582_vm2, %v1899_v7, -inf }
 0x150   : > { %v453_v0 = vpop.f32.mrb[7].mxu0  ;;  %v533_v1 = vpop.f32.mrb[7].mxu1  ;;  %v1906_v14 = vadd.f32 %v1173_v60, %v1847_v33  ;;  %v1916_v22 = vadd.f32 %v1197_v61, %v1847_v33 }
 0x151   : > { %v1909_v15 = vadd.f32 %v1847_v33, %v453_v0  ;;  %v1919_v23 = vadd.f32 %v1847_v33, %v533_v1 }
 0x152   : > { %v604_v24 = vsel %vm582_vm2, %v1906_v14, -inf  ;;  %v652_v32 = vsel %vm582_vm2, %v1916_v22, -inf }
 0x153   : > { %590 = vmax.xlane.f32.xlu1 %v589_v2  ;;  %638 = vmax.xlane.f32.xlu0 %v637_v3  ;;  %v1176_v4 = vpop.f32.mrb[8].mxu0  ;;  %v1200_v5 = vpop.f32.mrb[8].mxu1  ;;  %v601_v25 = vsel %vm582_vm2, %v1909_v15, -inf  ;;  %v649_v34 = vsel %vm582_vm2, %v1919_v23, -inf }
 0x154   : > { %v463_v10 = vpop.f32.mrb[9].mxu0  ;;  %v543_v11 = vpop.f32.mrb[9].mxu1  ;;  %v1926_v30 = vadd.f32 %v1176_v4, %v1847_v33  ;;  %v1936_v39 = vadd.f32 %v1200_v5, %v1847_v33 }
 0x155   : > { %v1929_v31 = vadd.f32 %v1847_v33, %v463_v10  ;;  %v1939_v41 = vadd.f32 %v1847_v33, %v543_v11 }
 0x156   : > { %v610_v42 = vsel %vm582_vm2, %v1926_v30, -inf  ;;  %v658_v48 = vsel %vm582_vm2, %v1936_v39, -inf }
 0x157   : > { %599 = vmax.xlane.f32.xlu1 %v598_v8  ;;  %596 = vmax.xlane.f32.xlu0 %v595_v9  ;;  %v1179_v12 = vpop.f32.mrb[10].mxu0  ;;  %v1203_v13 = vpop.f32.mrb[10].mxu1  ;;  %v607_v43 = vsel %vm582_vm2, %v1929_v31, -inf  ;;  %v655_v50 = vsel %vm582_vm2, %v1939_v41, -inf }
 0x158   : > { %v473_v18 = vpop.f32.mrb[11].mxu0  ;;  %v553_v19 = vpop.f32.mrb[11].mxu1  ;;  %v1946_v44 = vadd.f32 %v1179_v12, %v1847_v33  ;;  %v1956_v51 = vadd.f32 %v1203_v13, %v1847_v33 }
 0x159   : > { %v1949_v46 = vadd.f32 %v1847_v33, %v473_v18  ;;  %v1959_v52 = vadd.f32 %v1847_v33, %v553_v19 }
 0x15a   : > { %v616_v53 = vsel %vm582_vm2, %v1946_v44, -inf  ;;  %v664_v59 = vsel %vm582_vm2, %v1956_v51, -inf }
 0x15b   : > { %647 = vmax.xlane.f32.xlu1 %v646_v16  ;;  %644 = vmax.xlane.f32.xlu0 %v643_v17  ;;  %v1182_v20 = vpop.f32.mrb[12].mxu0  ;;  %v1206_v21 = vpop.f32.mrb[12].mxu1  ;;  %v613_v54 = vsel %vm582_vm2, %v1949_v46, -inf  ;;  %v661_v60 = vsel %vm582_vm2, %v1959_v52, -inf }
 0x15c   : > { %v483_v26 = vpop.f32.mrb[13].mxu0  ;;  %v563_v27 = vpop.f32.mrb[13].mxu1  ;;  %v1966_v55 = vadd.f32 %v1182_v20, %v1847_v33  ;;  %v1976_v61 = vadd.f32 %v1206_v21, %v1847_v33 }
 0x15d   : > { %v1969_v56 = vadd.f32 %v1847_v33, %v483_v26  ;;  %v1979_v0 = vadd.f32 %v1847_v33, %v563_v27 }
 0x15e   : > { %v622_v1 = vsel %vm582_vm2, %v1966_v55, -inf  ;;  %v670_v5 = vsel %vm582_vm2, %v1976_v61, -inf }
 0x15f   : > { %605 = vmax.xlane.f32.xlu1 %v604_v24  ;;  %602 = vmax.xlane.f32.xlu0 %v601_v25  ;;  %v1185_v28 = vpop.f32.mrb[14].mxu0  ;;  %v1209_v29 = vpop.f32.mrb[14].mxu1  ;;  %v619_v2 = vsel %vm582_vm2, %v1969_v56, -inf  ;;  %v667_v8 = vsel %vm582_vm2, %v1979_v0, -inf }
 0x160   : > { %v493_v35 = vpop.f32.mrb[15].mxu0  ;;  %v573_v38 = vpop.f32.mrb[15].mxu1  ;;  %v1986_v3 = vadd.f32 %v1185_v28, %v1847_v33  ;;  %v1996_v9 = vadd.f32 %v1209_v29, %v1847_v33 }
 0x161   : > { %v1989_v4 = vadd.f32 %v1847_v33, %v493_v35  ;;  %v1999_v10 = vadd.f32 %v1847_v33, %v573_v38 }
 0x162   : > { %v628_v11 = vsel %vm582_vm2, %v1986_v3, -inf  ;;  %v676_v13 = vsel %vm582_vm2, %v1996_v9, -inf }
 0x163   : > { %653 = vmax.xlane.f32.xlu1 %v652_v32  ;;  %650 = vmax.xlane.f32.xlu0 %v649_v34  ;;  %v625_v12 = vsel %vm582_vm2, %v1989_v4, -inf  ;;  %v673_v16 = vsel %vm582_vm2, %v1999_v10, -inf }
 0x167   : > { %611 = vmax.xlane.f32.xlu1 %v610_v42  ;;  %608 = vmax.xlane.f32.xlu0 %v607_v43 }
 0x16b   : > { %659 = vmax.xlane.f32.xlu1 %v658_v48  ;;  %656 = vmax.xlane.f32.xlu0 %v655_v50 }
 0x16f   : > { %617 = vmax.xlane.f32.xlu1 %v616_v53  ;;  %614 = vmax.xlane.f32.xlu0 %v613_v54 }
 0x173   : > { %665 = vmax.xlane.f32.xlu1 %v664_v59  ;;  %662 = vmax.xlane.f32.xlu0 %v661_v60 }
 0x177   : > { %623 = vmax.xlane.f32.xlu1 %v622_v1  ;;  %620 = vmax.xlane.f32.xlu0 %v619_v2 }
 0x17b   : > { %671 = vmax.xlane.f32.xlu1 %v670_v5  ;;  %668 = vmax.xlane.f32.xlu0 %v667_v8 }
 0x17f   : > { %629 = vmax.xlane.f32.xlu1 %v628_v11  ;;  %626 = vmax.xlane.f32.xlu0 %v625_v12 }
 0x183   : > { %677 = vmax.xlane.f32.xlu1 %v676_v13  ;;  %674 = vmax.xlane.f32.xlu0 %v673_v16 }
 0x1d4   : > { %v636_v17 = vpop.xlane.xlu1 %635  ;;  %v588_v18 = vpop.xlane.xlu0 %587 }
 0x1d5   : > { %v696_v33 = vsub.f32 %v1853_v37, %v636_v17  ;;  %v680_v19 = vsub.f32 %v1850_v36, %v588_v18 }
 0x1d7   : > { %v745_v20 = vmul.f32 1.442695, %v696_v33  ;;  %v713_v21 = vmul.f32 1.442695, %v680_v19 }
 0x1d8   : > { %v594_v24 = vpop.xlane.xlu1 %593  ;;  %v585_v25 = vpop.xlane.xlu0 %584 }
 0x1d9   : > { %v682_v26 = vsub.f32 %v1863_v45, %v594_v24  ;;  %v679_v27 = vsub.f32 %v1856_v40, %v585_v25  ;;  %1283 = vpow2.f32 %v713_v21 }
 0x1da   : > { %1285 = vpow2.f32 %v745_v20 }
 0x1db   : > { %v717_v28 = vmul.f32 1.442695, %v682_v26  ;;  %v711_v29 = vmul.f32 1.442695, %v679_v27 }
 0x1dc   : > { %v642_v32 = vpop.xlane.xlu1 %641  ;;  %v633_v34 = vpop.xlane.xlu0 %632 }
 0x1dd   : > { %v698_v35 = vsub.f32 %v1866_v47, %v642_v32  ;;  %v695_v37 = vsub.f32 %v1869_v49, %v633_v34  ;;  %1287 = vpow2.f32 %v711_v29 }
 0x1de   : > { %1289 = vpow2.f32 %v717_v28 }
 0x1df   : > { %v743_v36 = vmul.f32 1.442695, %v695_v37  ;;  %v749_v38 = vmul.f32 1.442695, %v698_v35 }
 0x1e0   : > { %v591_v42 = vpop.xlane.xlu1 %590  ;;  %v639_v43 = vpop.xlane.xlu0 %638 }
 0x1e1   : > { %v681_v45 = vsub.f32 %v1878_v57, %v591_v42  ;;  %v697_v40 = vsub.f32 %v1881_v58, %v639_v43  ;;  %1291 = vpow2.f32 %v743_v36 }
 0x1e2   : > { %1293 = vpow2.f32 %v749_v38 }
 0x1e3   : > { %v715_v48 = vmul.f32 1.442695, %v681_v45  ;;  %v2017_v50 = vpop.eup %1283  ;;  %v747_v53 = vmul.f32 1.442695, %v697_v40 }
 0x1e4   : > { %v600_v54 = vpop.xlane.xlu1 %599  ;;  %v597_v47 = vpop.xlane.xlu0 %596  ;;  %v778_v57 = vsel %vm582_vm2, %v2017_v50, 0.0 }
 0x1e5   : > { %v2019_v59 = vpop.eup %1285  ;;  %1295 = vpow2.f32 %v715_v48  ;;  %v684_v49 = vsub.f32 %v1886_v62, %v600_v54  ;;  %v683_v60 = vsub.f32 %v1889_v63, %v597_v47  ;;  %779 = vadd.xlane.f32.xlu1 %v778_v57 }
 0x1e6   : > { %1297 = vpow2.f32 %v747_v53  ;;  %v826_v11 = vsel %vm582_vm2, %v2019_v59, 0.0 }
 0x1e7   : > { %v721_v58 = vmul.f32 1.442695, %v684_v49  ;;  %v2025_v1 = vpop.eup %1287  ;;  %v719_v2 = vmul.f32 1.442695, %v683_v60 }
 0x1e8   : > { %v648_v5 = vpop.xlane.xlu1 %647  ;;  %v645_v8 = vpop.xlane.xlu0 %644  ;;  %v775_v13 = vsel %vm582_vm2, %v2025_v1, 0.0 }
 0x1e9   : > { %v2029_v12 = vpop.eup %1289  ;;  %1299 = vpow2.f32 %v721_v58  ;;  %v700_v62 = vsub.f32 %v1896_v6, %v648_v5  ;;  %v699_v63 = vsub.f32 %v1899_v7, %v645_v8  ;;  %827 = vadd.xlane.f32.xlu1 %v826_v11  ;;  %776 = vadd.xlane.f32.xlu0 %v775_v13 }
 0x1ea   : > { %1301 = vpow2.f32 %v719_v2  ;;  %v784_v20 = vsel %vm582_vm2, %v2029_v12, 0.0 }
 0x1eb   : > { %v753_v16 = vmul.f32 1.442695, %v700_v62  ;;  %v2035_v17 = vpop.eup %1291  ;;  %v751_v18 = vmul.f32 1.442695, %v699_v63 }
 0x1ec   : > { %v606_v33 = vpop.xlane.xlu1 %605  ;;  %v603_v19 = vpop.xlane.xlu0 %602  ;;  %v823_v21 = vsel %vm582_vm2, %v2035_v17, 0.0 }
 0x1ed   : > { %1303 = vpow2.f32 %v753_v16  ;;  %v686_v6 = vsub.f32 %v1906_v14, %v606_v33  ;;  %v685_v7 = vsub.f32 %v1909_v15, %v603_v19  ;;  %v2043_v24 = vpop.eup %1293  ;;  %785 = vadd.xlane.f32.xlu1 %v784_v20  ;;  %824 = vadd.xlane.f32.xlu0 %v823_v21 }
 0x1ee   : > { %1305 = vpow2.f32 %v751_v18  ;;  %v832_v34 = vsel %vm582_vm2, %v2043_v24, 0.0 }
 0x1ef   : > { %v2045_v25 = vpop.eup %1295  ;;  %v725_v26 = vmul.f32 1.442695, %v686_v6  ;;  %v723_v27 = vmul.f32 1.442695, %v685_v7 }
 0x1f0   : > { %v654_v28 = vpop.xlane.xlu1 %653  ;;  %v651_v29 = vpop.xlane.xlu0 %650  ;;  %v781_v32 = vsel %vm582_vm2, %v2045_v25, 0.0 }
 0x1f1   : > { %1307 = vpow2.f32 %v725_v26  ;;  %v702_v14 = vsub.f32 %v1916_v22, %v654_v28  ;;  %v701_v15 = vsub.f32 %v1919_v23, %v651_v29  ;;  %v2053_v35 = vpop.eup %1297  ;;  %833 = vadd.xlane.f32.xlu1 %v832_v34  ;;  %782 = vadd.xlane.f32.xlu0 %v781_v32 }
 0x1f2   : > { %1309 = vpow2.f32 %v723_v27  ;;  %v829_v40 = vsel %vm582_vm2, %v2053_v35, 0.0 }
 0x1f3   : > { %v2055_v37 = vpop.eup %1299  ;;  %v757_v36 = vmul.f32 1.442695, %v702_v14  ;;  %v755_v38 = vmul.f32 1.442695, %v701_v15 }
 0x1f4   : > { %v612_v42 = vpop.xlane.xlu1 %611  ;;  %v609_v43 = vpop.xlane.xlu0 %608  ;;  %v790_v45 = vsel %vm582_vm2, %v2055_v37, 0.0 }
 0x1f5   : > { %1311 = vpow2.f32 %v757_v36  ;;  %v688_v22 = vsub.f32 %v1926_v30, %v612_v42  ;;  %v687_v23 = vsub.f32 %v1929_v31, %v609_v43  ;;  %v2063_v48 = vpop.eup %1301  ;;  %791 = vadd.xlane.f32.xlu1 %v790_v45  ;;  %830 = vadd.xlane.f32.xlu0 %v829_v40 }
 0x1f6   : > { %1313 = vpow2.f32 %v755_v38  ;;  %v787_v58 = vsel %vm582_vm2, %v2063_v48, 0.0 }
 0x1f7   : > { %v2065_v53 = vpop.eup %1303  ;;  %v729_v54 = vmul.f32 1.442695, %v688_v22  ;;  %v727_v47 = vmul.f32 1.442695, %v687_v23 }
 0x1f8   : > { %v660_v49 = vpop.xlane.xlu1 %659  ;;  %v657_v60 = vpop.xlane.xlu0 %656  ;;  %v838_v57 = vsel %vm582_vm2, %v2065_v53, 0.0 }
 0x1f9   : > { %1315 = vpow2.f32 %v729_v54  ;;  %v704_v30 = vsub.f32 %v1936_v39, %v660_v49  ;;  %v703_v31 = vsub.f32 %v1939_v41, %v657_v60  ;;  %v2073_v2 = vpop.eup %1305  ;;  %839 = vadd.xlane.f32.xlu1 %v838_v57  ;;  %788 = vadd.xlane.f32.xlu0 %v787_v58 }
 0x1fa   : > { %1317 = vpow2.f32 %v727_v47  ;;  %v835_v16 = vsel %vm582_vm2, %v2073_v2, 0.0 }
 0x1fb   : > { %v2075_v5 = vpop.eup %1307  ;;  %v761_v8 = vmul.f32 1.442695, %v704_v30  ;;  %v759_v11 = vmul.f32 1.442695, %v703_v31 }
 0x1fc   : > { %v618_v62 = vpop.xlane.xlu1 %617  ;;  %v615_v63 = vpop.xlane.xlu0 %614  ;;  %v796_v13 = vsel %vm582_vm2, %v2075_v5, 0.0 }
 0x1fd   : > { %1319 = vpow2.f32 %v761_v8  ;;  %v690_v39 = vsub.f32 %v1946_v44, %v618_v62  ;;  %v689_v41 = vsub.f32 %v1949_v46, %v615_v63  ;;  %v2083_v18 = vpop.eup %1309  ;;  %797 = vadd.xlane.f32.xlu1 %v796_v13  ;;  %836 = vadd.xlane.f32.xlu0 %v835_v16 }
 0x1fe   : > { %1321 = vpow2.f32 %v759_v11  ;;  %v793_v26 = vsel %vm582_vm2, %v2083_v18, 0.0 }
 0x1ff   : > { %v2085_v33 = vpop.eup %1311  ;;  %v733_v19 = vmul.f32 1.442695, %v690_v39  ;;  %v731_v20 = vmul.f32 1.442695, %v689_v41 }
 0x200   : > { %v666_v6 = vpop.xlane.xlu1 %665  ;;  %v663_v7 = vpop.xlane.xlu0 %662  ;;  %v844_v21 = vsel %vm582_vm2, %v2085_v33, 0.0 }
 0x201   : > { %1323 = vpow2.f32 %v733_v19  ;;  %v706_v44 = vsub.f32 %v1956_v51, %v666_v6  ;;  %v705_v46 = vsub.f32 %v1959_v52, %v663_v7  ;;  %v2093_v27 = vpop.eup %1313  ;;  %845 = vadd.xlane.f32.xlu1 %v844_v21  ;;  %794 = vadd.xlane.f32.xlu0 %v793_v26 }
 0x202   : > { %1325 = vpow2.f32 %v731_v20  ;;  %v841_v36 = vsel %vm582_vm2, %v2093_v27, 0.0 }
 0x203   : > { %v2095_v28 = vpop.eup %1315  ;;  %v765_v29 = vmul.f32 1.442695, %v706_v44  ;;  %v763_v32 = vmul.f32 1.442695, %v705_v46 }
 0x204   : > { %v624_v14 = vpop.xlane.xlu1 %623  ;;  %v621_v15 = vpop.xlane.xlu0 %620  ;;  %v802_v34 = vsel %vm582_vm2, %v2095_v28, 0.0 }
 0x205   : > { %1327 = vpow2.f32 %v765_v29  ;;  %v692_v51 = vsub.f32 %v1966_v55, %v624_v14  ;;  %v691_v52 = vsub.f32 %v1969_v56, %v621_v15  ;;  %v2103_v38 = vpop.eup %1317  ;;  %803 = vadd.xlane.f32.xlu1 %v802_v34  ;;  %842 = vadd.xlane.f32.xlu0 %v841_v36 }
 0x206   : > { %1329 = vpow2.f32 %v763_v32  ;;  %v799_v54 = vsel %vm582_vm2, %v2103_v38, 0.0 }
 0x207   : > { %v2105_v42 = vpop.eup %1319  ;;  %v737_v43 = vmul.f32 1.442695, %v692_v51  ;;  %v735_v45 = vmul.f32 1.442695, %v691_v52 }
 0x208   : > { %v672_v22 = vpop.xlane.xlu1 %671  ;;  %v669_v23 = vpop.xlane.xlu0 %668  ;;  %v850_v40 = vsel %vm582_vm2, %v2105_v42, 0.0 }
 0x209   : > { %1331 = vpow2.f32 %v737_v43  ;;  %v708_v55 = vsub.f32 %v1976_v61, %v672_v22  ;;  %v707_v56 = vsub.f32 %v1979_v0, %v669_v23  ;;  %v2113_v47 = vpop.eup %1321  ;;  %851 = vadd.xlane.f32.xlu1 %v850_v40  ;;  %800 = vadd.xlane.f32.xlu0 %v799_v54 }
 0x20a   : > { %1333 = vpow2.f32 %v735_v45  ;;  %v847_v8 = vsel %vm582_vm2, %v2113_v47, 0.0 }
 0x20b   : > { %v2115_v49 = vpop.eup %1323  ;;  %v769_v60 = vmul.f32 1.442695, %v708_v55  ;;  %v767_v57 = vmul.f32 1.442695, %v707_v56 }
 0x20c   : > { %v630_v30 = vpop.xlane.xlu1 %629  ;;  %v627_v31 = vpop.xlane.xlu0 %626  ;;  %v808_v58 = vsel %vm582_vm2, %v2115_v49, 0.0 }
 0x20d   : > { %1335 = vpow2.f32 %v769_v60  ;;  %v694_v61 = vsub.f32 %v1986_v3, %v630_v30  ;;  %v693_v0 = vsub.f32 %v1989_v4, %v627_v31  ;;  %v2123_v11 = vpop.eup %1325  ;;  %809 = vadd.xlane.f32.xlu1 %v808_v58  ;;  %848 = vadd.xlane.f32.xlu0 %v847_v8 }
 0x20e   : > { %1337 = vpow2.f32 %v767_v57  ;;  %v805_v19 = vsel %vm582_vm2, %v2123_v11, 0.0 }
 0x20f   : > { %v2125_v62 = vpop.eup %1327  ;;  %v741_v63 = vmul.f32 1.442695, %v694_v61  ;;  %v739_v13 = vmul.f32 1.442695, %v693_v0 }
 0x210   : > { %v678_v39 = vpop.xlane.xlu1 %677  ;;  %v675_v41 = vpop.xlane.xlu0 %674  ;;  %v856_v16 = vsel %vm582_vm2, %v2125_v62, 0.0 }
 0x211   : > { %1339 = vpow2.f32 %v741_v63  ;;  %v710_v3 = vsub.f32 %v1996_v9, %v678_v39  ;;  %v709_v4 = vsub.f32 %v1999_v10, %v675_v41  ;;  %v2133_v20 = vpop.eup %1329  ;;  %857 = vadd.xlane.f32.xlu1 %v856_v16  ;;  %806 = vadd.xlane.f32.xlu0 %v805_v19 }
 0x212   : > { %1341 = vpow2.f32 %v739_v13  ;;  %v853_v9 = vsel %vm582_vm2, %v2133_v20, 0.0 }
 0x213   : > { %v2135_v6 = vpop.eup %1331  ;;  %v773_v7 = vmul.f32 1.442695, %v710_v3  ;;  %v771_v21 = vmul.f32 1.442695, %v709_v4 }
 0x214   : > { %v814_v44 = vsel %vm582_vm2, %v2135_v6, 0.0  ;;  %v2141_v10 = vpop.eup %1333 }
 0x215   : > { %1343 = vpow2.f32 %v773_v7  ;;  %815 = vadd.xlane.f32.xlu1 %v814_v44  ;;  %854 = vadd.xlane.f32.xlu0 %v853_v9  ;;  %v811_v29 = vsel %vm582_vm2, %v2141_v10, 0.0 }
 0x216   : > { %1345 = vpow2.f32 %v771_v21 }
 0x217   : > { %v2143_v46 = vpop.eup %1335 }
 0x218   : > { %v862_v26 = vsel %vm582_vm2, %v2143_v46, 0.0  ;;  %v2149_v32 = vpop.eup %1337 }
 0x219   : > { %863 = vadd.xlane.f32.xlu1 %v862_v26  ;;  %812 = vadd.xlane.f32.xlu0 %v811_v29  ;;  %v859_v34 = vsel %vm582_vm2, %v2149_v32, 0.0 }
 0x21b   : > { %v2151_v14 = vpop.eup %1339 }
 0x21c   : > { %v820_v15 = vsel %vm582_vm2, %v2151_v14, 0.0  ;;  %v2157_v51 = vpop.eup %1341 }
 0x21d   : > { %821 = vadd.xlane.f32.xlu1 %v820_v15  ;;  %860 = vadd.xlane.f32.xlu0 %v859_v34  ;;  %v817_v43 = vsel %vm582_vm2, %v2157_v51, 0.0 }
 0x21f   : > { %v2159_v52 = vpop.eup %1343 }
 0x220   : > { %v868_v36 = vsel %vm582_vm2, %v2159_v52, 0.0  ;;  %v2165_v45 = vpop.eup %1345 }
 0x221   : > { %869 = vadd.xlane.f32.xlu1 %v868_v36  ;;  %818 = vadd.xlane.f32.xlu0 %v817_v43  ;;  %v865_v22 = vsel %vm582_vm2, %v2165_v45, 0.0 }
 0x225   : > { %866 = vadd.xlane.f32.xlu0 %v865_v22 }
 0x272   : > { %v780_v23 = vpop.xlane.xlu1 %779 }
 0x273   : > { %1347 = vrcp.f32 %v780_v23 }
 0x276   : > { %v828_v40 = vpop.xlane.xlu1 %827  ;;  %v777_v55 = vpop.xlane.xlu0 %776 }
 0x277   : > { %1349 = vrcp.f32 %v828_v40 }
 0x278   : > { %1351 = vrcp.f32 %v777_v55 }
 0x27a   : > { %v786_v56 = vpop.xlane.xlu1 %785  ;;  %v825_v54 = vpop.xlane.xlu0 %824 }
 0x27b   : > { %1353 = vrcp.f32 %v786_v56 }
 0x27c   : > { %1355 = vrcp.f32 %v825_v54 }
 0x27d   : > { %v1348_v60 = vpop.eup %1347 }
 0x27e   : > { %v904_v57 = vmul.f32 %v1348_v60, %v2017_v50  ;;  %v834_v30 = vpop.xlane.xlu1 %833  ;;  %v783_v31 = vpop.xlane.xlu0 %782 }
 0x27f   : > { %1357 = vrcp.f32 %v834_v30 }
 0x280   : > { %936 = vst.msk [vmem:[%s2172_s23 + $0x8] sm:$0xff] %vm582_vm2, %v904_v57  ;;  %1359 = vrcp.f32 %v783_v31 }
 0x281   : > { %v1350_v58 = vpop.eup %1349 }
 0x282   : > { %v1352_v61 = vpop.eup %1351  ;;  %v920_v0 = vmul.f32 %v1350_v58, %v2019_v59  ;;  %v792_v8 = vpop.xlane.xlu1 %791 }
 0x283   : > { %v831_v63 = vpop.xlane.xlu0 %830  ;;  %v903_v50 = vmul.f32 %v1352_v61, %v2025_v1  ;;  %1361 = vrcp.f32 %v792_v8 }
 0x284   : > { %952 = vst.msk [vmem:[%s2172_s23 + $0x88] sm:$0xff] %vm582_vm2, %v920_v0  ;;  %1363 = vrcp.f32 %v831_v63 }
 0x285   : > { %v1354_v13 = vpop.eup %1353  ;;  %935 = vst.msk [vmem:[%s2172_s23] sm:$0xff] %vm582_vm2, %v903_v50 }
 0x286   : > { %v1356_v39 = vpop.eup %1355  ;;  %v906_v41 = vmul.f32 %v1354_v13, %v2029_v12  ;;  %v840_v16 = vpop.xlane.xlu1 %839 }
 0x287   : > { %v789_v3 = vpop.xlane.xlu0 %788  ;;  %v919_v59 = vmul.f32 %v1356_v39, %v2035_v17  ;;  %1365 = vrcp.f32 %v840_v16 }
 0x288   : > { %938 = vst.msk [vmem:[%s2172_s23 + $0x18] sm:$0xff] %vm582_vm2, %v906_v41  ;;  %1367 = vrcp.f32 %v789_v3 }
 0x289   : > { %v1358_v1 = vpop.eup %1357  ;;  %951 = vst.msk [vmem:[%s2172_s23 + $0x80] sm:$0xff] %vm582_vm2, %v919_v59 }
 0x28a   : > { %v1360_v4 = vpop.eup %1359  ;;  %v922_v19 = vmul.f32 %v1358_v1, %v2043_v24  ;;  %v798_v7 = vpop.xlane.xlu1 %797 }
 0x28b   : > { %v837_v21 = vpop.xlane.xlu0 %836  ;;  %v905_v12 = vmul.f32 %v1360_v4, %v2045_v25  ;;  %1369 = vrcp.f32 %v798_v7 }
 0x28c   : > { %954 = vst.msk [vmem:[%s2172_s23 + $0x98] sm:$0xff] %vm582_vm2, %v922_v19  ;;  %1371 = vrcp.f32 %v837_v21 }
 0x28d   : > { %v1362_v17 = vpop.eup %1361  ;;  %937 = vst.msk [vmem:[%s2172_s23 + $0x10] sm:$0xff] %vm582_vm2, %v905_v12 }
 0x28e   : > { %v1364_v44 = vpop.eup %1363  ;;  %v908_v9 = vmul.f32 %v1362_v17, %v2055_v37  ;;  %v846_v26 = vpop.xlane.xlu1 %845 }
 0x28f   : > { %v795_v29 = vpop.xlane.xlu0 %794  ;;  %v921_v24 = vmul.f32 %v1364_v44, %v2053_v35  ;;  %1373 = vrcp.f32 %v846_v26 }
 0x290   : > { %940 = vst.msk [vmem:[%s2172_s23 + $0x28] sm:$0xff] %vm582_vm2, %v908_v9  ;;  %1375 = vrcp.f32 %v795_v29 }
 0x291   : > { %v1366_v25 = vpop.eup %1365  ;;  %953 = vst.msk [vmem:[%s2172_s23 + $0x90] sm:$0xff] %vm582_vm2, %v921_v24 }
 0x292   : > { %v1368_v15 = vpop.eup %1367  ;;  %v924_v34 = vmul.f32 %v1366_v25, %v2065_v53  ;;  %v804_v36 = vpop.xlane.xlu1 %803 }
 0x293   : > { %v843_v43 = vpop.xlane.xlu0 %842  ;;  %v907_v37 = vmul.f32 %v1368_v15, %v2063_v48  ;;  %1377 = vrcp.f32 %v804_v36 }
 0x294   : > { %956 = vst.msk [vmem:[%s2172_s23 + $0xa8] sm:$0xff] %vm582_vm2, %v924_v34  ;;  %1379 = vrcp.f32 %v843_v43 }
 0x295   : > { %v1370_v35 = vpop.eup %1369  ;;  %939 = vst.msk [vmem:[%s2172_s23 + $0x20] sm:$0xff] %vm582_vm2, %v907_v37 }
 0x296   : > { %v1372_v22 = vpop.eup %1371  ;;  %v910_v23 = vmul.f32 %v1370_v35, %v2075_v5  ;;  %v852_v40 = vpop.xlane.xlu1 %851 }
 0x297   : > { %v801_v55 = vpop.xlane.xlu0 %800  ;;  %v923_v53 = vmul.f32 %v1372_v22, %v2073_v2  ;;  %1381 = vrcp.f32 %v852_v40 }
 0x298   : > { %942 = vst.msk [vmem:[%s2172_s23 + $0x38] sm:$0xff] %vm582_vm2, %v910_v23  ;;  %1383 = vrcp.f32 %v801_v55 }
 0x299   : > { %v1374_v48 = vpop.eup %1373  ;;  %955 = vst.msk [vmem:[%s2172_s23 + $0xa0] sm:$0xff] %vm582_vm2, %v923_v53 }
 0x29a   : > { %v1376_v56 = vpop.eup %1375  ;;  %v926_v54 = vmul.f32 %v1374_v48, %v2085_v33  ;;  %v810_v60 = vpop.xlane.xlu1 %809 }
 0x29b   : > { %v849_v57 = vpop.xlane.xlu0 %848  ;;  %v909_v5 = vmul.f32 %v1376_v56, %v2083_v18  ;;  %1385 = vrcp.f32 %v810_v60 }
 0x29c   : > { %958 = vst.msk [vmem:[%s2172_s23 + $0xb8] sm:$0xff] %vm582_vm2, %v926_v54  ;;  %1387 = vrcp.f32 %v849_v57 }
 0x29d   : > { %v1378_v2 = vpop.eup %1377  ;;  %941 = vst.msk [vmem:[%s2172_s23 + $0x30] sm:$0xff] %vm582_vm2, %v909_v5 }
 0x29e   : > { %v1380_v30 = vpop.eup %1379  ;;  %v912_v31 = vmul.f32 %v1378_v2, %v2095_v28  ;;  %v858_v58 = vpop.xlane.xlu1 %857 }
 0x29f   : > { %v807_v61 = vpop.xlane.xlu0 %806  ;;  %v925_v33 = vmul.f32 %v1380_v30, %v2093_v27  ;;  %1389 = vrcp.f32 %v858_v58 }
 0x2a0   : > { %944 = vst.msk [vmem:[%s2172_s23 + $0x48] sm:$0xff] %vm582_vm2, %v912_v31  ;;  %1391 = vrcp.f32 %v807_v61 }
 0x2a1   : > { %v1382_v18 = vpop.eup %1381  ;;  %957 = vst.msk [vmem:[%s2172_s23 + $0xb0] sm:$0xff] %vm582_vm2, %v925_v33 }
 0x2a2   : > { %v1384_v0 = vpop.eup %1383  ;;  %v928_v8 = vmul.f32 %v1382_v18, %v2105_v42  ;;  %v816_v63 = vpop.xlane.xlu1 %815 }
 0x2a3   : > { %v855_v50 = vpop.xlane.xlu0 %854  ;;  %v911_v28 = vmul.f32 %v1384_v0, %v2103_v38  ;;  %1393 = vrcp.f32 %v816_v63 }
 0x2a4   : > { %960 = vst.msk [vmem:[%s2172_s23 + $0xc8] sm:$0xff] %vm582_vm2, %v928_v8  ;;  %1395 = vrcp.f32 %v855_v50 }
 0x2a5   : > { %v1386_v27 = vpop.eup %1385  ;;  %943 = vst.msk [vmem:[%s2172_s23 + $0x40] sm:$0xff] %vm582_vm2, %v911_v28 }
 0x2a6   : > { %v1388_v13 = vpop.eup %1387  ;;  %v914_v39 = vmul.f32 %v1386_v27, %v2115_v49  ;;  %v864_v41 = vpop.xlane.xlu1 %863 }
 0x2a7   : > { %v813_v16 = vpop.xlane.xlu0 %812  ;;  %v927_v42 = vmul.f32 %v1388_v13, %v2113_v47  ;;  %1397 = vrcp.f32 %v864_v41 }
 0x2a8   : > { %946 = vst.msk [vmem:[%s2172_s23 + $0x58] sm:$0xff] %vm582_vm2, %v914_v39  ;;  %1399 = vrcp.f32 %v813_v16 }
 0x2a9   : > { %v1390_v38 = vpop.eup %1389  ;;  %959 = vst.msk [vmem:[%s2172_s23 + $0xc0] sm:$0xff] %vm582_vm2, %v927_v42 }
 0x2aa   : > { %v1392_v3 = vpop.eup %1391  ;;  %v930_v59 = vmul.f32 %v1390_v38, %v2125_v62  ;;  %v822_v1 = vpop.xlane.xlu1 %821 }
 0x2ab   : > { %v861_v4 = vpop.xlane.xlu0 %860  ;;  %v913_v49 = vmul.f32 %v1392_v3, %v2123_v11  ;;  %1401 = vrcp.f32 %v822_v1 }
 0x2ac   : > { %962 = vst.msk [vmem:[%s2172_s23 + $0xd8] sm:$0xff] %vm582_vm2, %v930_v59  ;;  %1403 = vrcp.f32 %v861_v4 }
 0x2ad   : > { %v1394_v47 = vpop.eup %1393  ;;  %945 = vst.msk [vmem:[%s2172_s23 + $0x50] sm:$0xff] %vm582_vm2, %v913_v49 }
 0x2ae   : > { %v1396_v19 = vpop.eup %1395  ;;  %v916_v7 = vmul.f32 %v1394_v47, %v2135_v6  ;;  %v870_v21 = vpop.xlane.xlu1 %869 }
 0x2af   : > { %v819_v12 = vpop.xlane.xlu0 %818  ;;  %v929_v62 = vmul.f32 %v1396_v19, %v2133_v20  ;;  %1405 = vrcp.f32 %v870_v21 }
 0x2b0   : > { %948 = vst.msk [vmem:[%s2172_s23 + $0x68] sm:$0xff] %vm582_vm2, %v916_v7  ;;  %1407 = vrcp.f32 %v819_v12 }
 0x2b1   : > { %v1398_v11 = vpop.eup %1397  ;;  %961 = vst.msk [vmem:[%s2172_s23 + $0xd0] sm:$0xff] %vm582_vm2, %v929_v62 }
 0x2b2   : > { %v1400_v17 = vpop.eup %1399  ;;  %v932_v44 = vmul.f32 %v1398_v11, %v2143_v46 }
 0x2b3   : > { %v867_v6 = vpop.xlane.xlu0 %866  ;;  %v915_v9 = vmul.f32 %v1400_v17, %v2141_v10 }
 0x2b4   : > { %1409 = vrcp.f32 %v867_v6  ;;  %964 = vst.msk [vmem:[%s2172_s23 + $0xe8] sm:$0xff] %vm582_vm2, %v932_v44 }
 0x2b5   : > { %v1402_v20 = vpop.eup %1401  ;;  %947 = vst.msk [vmem:[%s2172_s23 + $0x60] sm:$0xff] %vm582_vm2, %v915_v9 }
 0x2b6   : > { %v1404_v26 = vpop.eup %1403  ;;  %v918_v29 = vmul.f32 %v1402_v20, %v2151_v14 }
 0x2b7   : > { %v931_v24 = vmul.f32 %v1404_v26, %v2149_v32 }
 0x2b8   : > { %950 = vst.msk [vmem:[%s2172_s23 + $0x78] sm:$0xff] %vm582_vm2, %v918_v29 }
 0x2b9   : > { %v1406_v46 = vpop.eup %1405  ;;  %963 = vst.msk [vmem:[%s2172_s23 + $0xe0] sm:$0xff] %vm582_vm2, %v931_v24 }
 0x2ba   : > { %v1408_v10 = vpop.eup %1407  ;;  %v934_v25 = vmul.f32 %v1406_v46, %v2159_v52 }
 0x2bb   : > { %v917_v15 = vmul.f32 %v1408_v10, %v2157_v51 }
 0x2bc   : > { %966 = vst.msk [vmem:[%s2172_s23 + $0xf8] sm:$0xff] %vm582_vm2, %v934_v25 }
 0x2bd   : > { %949 = vst.msk [vmem:[%s2172_s23 + $0x70] sm:$0xff] %vm582_vm2, %v917_v15 }
 0x2be   : > { %v1410_v14 = vpop.eup %1409 }
 0x2bf   : > { %v933_v32 = vmul.f32 %v1410_v14, %v2165_v45 }
 0x2c1   : > { %965 = vst.msk [vmem:[%s2172_s23 + $0xf0] sm:$0xff] %vm582_vm2, %v933_v32 }
 0x2c2   : > { %1510 = shalt.err (!%p1507_p6)
}
 0x2c3   : > { %s1511_s4 = scalar_lea.hbm %s2271_s10, 4096  ;;  %s1515_s29 = scalar_lea.hbm %s2323_s3, 8192 }
 0x2c4   : > { %p1512_p12 = scmp.ne.s32.totalorder %s2271_s10, %s1511_s4  ;;  %p1516_p11 = scmp.lt.u32.totalorder %s2271_s10, %s2323_s3 }
 0x2c5   : > { %p1517_p7 = scmp.lt.u32.totalorder %s1515_s29, %s1511_s4  ;;  %p1519_p8 = scmp.lt.u32.totalorder %s1511_s4, %s2271_s10 }
 0x2c6   : > { %p1513_p13 = pnand %p1512_p12, %p2342_p4 }
 0x2c7   : > { %p1518_p3 = por %p1517_p7, %p1516_p11 }
 0x2c8   : > { %p1514_p1 = pneg %p1513_p13 }
 0x2c9   : > { %p1520_p5 = por %p1519_p8, %p1518_p3 }
 0x2cb   : > { %p1521_p10 = pnand %p1520_p5, %p1514_p1 }
 0x2cd   : > { %1524 = shalt.err (!%p1521_p10)
}
 0x2ce   : > { %s1575_s17 = smov 128   ;;  %s1576_s23 = smov 8  }
 0x2cf   : > { %1222 = dma.vmem_to_hbm [thread:$0]  (%p2342_p4), %s2273_s30, 4096, %s2271_s10, %s968_s16, %s1575_s17, %s1575_s17, %s1576_s23  }
 0x2d0 PF: > { %s996_s26 = sand.u32 1, %s1555_s12   ;;  %p2343_p2 = scmp.ne.s32.totalorder %s2332_s25, 0 }
 0x2d1   : > { %p2344_p0 = scmp.ge.s32.totalorder %s1567_s15, 2  ;;  %s997_s8 = scalar_lea.sflag [#allocation4], %s996_s26 }
 0x2d3   : > { %p1236_p9 = pnand %p2344_p0, %p2343_p2 }
 0x2d5   : > { %1550 = dma.done.wait (!%p1236_p9), %s997_s8, 4096  }
 0x2d6   : > { %1552 = vsyncadd (!%p1236_p9), %s997_s8, 4294963200  ;;  %p17_p6 = scmp.ge.s32.totalorder %s1622_s18, 4   ;;  %s2345_s12 = smov %s1559_s13 }
 0x2d7   : > { %s2346_s13 = smov %s1563_s14  ;;  %s2347_s14 = smov %s1634_s21 }
 0x2d8   : > { %s2348_s15 = smov %s1622_s18  ;;  %19 = sbr.rel (!%p17_p6) target bundleno = 6 (0x6), region = 85 }
 0x2df   :  { %1002 = vsyncpa [#allocation3], 1 }
 0x2e0   :  { %1004 = vsyncpa [#allocation3 + $0x1], 1 }
 0x2e1   :  { %1005 = vsyncpa [#allocation6], 1 }
 0x2e2   :  { %1006 = vsyncpa [#allocation4], 1 }
 0x2e3   :  { %1008 = vsyncpa [#allocation4 + $0x1], 1 }

</bundles_post_ra>
